<compile_context>
chip_gen: v7x
topology: tpu7x:2x2x1
jax: 0.10.0
libtpu: 0.0.40
codegen_flags: <defaults>
</compile_context>

<pallas_src>
import jax
import jax.numpy as jnp
from jax.experimental import pallas as pl
from jax.experimental.pallas import tpu as pltpu


def _round_up(n, m):
    return (n + m - 1) // m * m


def concat_linear_kernel(ctx_ref, x_ref, wx_ref, wc_ref, b_ref, o_ref):
    """Fused ConcatLinear forward for one (batch, sequence-tile) grid step.

    ctx_ref: (1, dim_ctx)          x_ref:  (tile_s, dim_in)
    wx_ref:  (dim_in, dim_out_p)   wc_ref: (dim_ctx, dim_out_p)
    b_ref:   (1, dim_out_p)        o_ref:  (tile_s, dim_out_p)
    """
    # Per-batch context contribution (+ bias): tiny K = 1 + dim_c matmul.
    ctx_term = (
        jnp.dot(ctx_ref[...], wc_ref[...], preferred_element_type=jnp.float32)
        + b_ref[...].astype(jnp.float32)
    )  # (1, dim_out_p)

    # Main matmul over the row tile (fills the MXU M dimension).
    y = jnp.dot(x_ref[...], wx_ref[...], preferred_element_type=jnp.float32)

    o_ref[...] = (y + ctx_term).astype(o_ref.dtype)


def concat_linear(context, x, weight, bias, c=None, *, tile_s=256):
    """ConcatLinear forward.

    context: (B, 1 + dim_c)
    x:       (B, S, dim_in) or (B, dim_in)
    weight:  (dim_in + 1 + dim_c, dim_out)   # stored (in_features, out_features)
    bias:    (dim_out,)
    c:       unused (kept for signature parity with the PyTorch module)
    """
    del c  # the reference module ignores it

    x_was_2d = x.ndim == 2
    x3 = x[:, None, :] if x_was_2d else x
    B, S, dim_in = x3.shape
    dim_ctx = context.shape[-1]
    dim_out = weight.shape[1]
    assert weight.shape[0] == dim_in + dim_ctx

    out_dtype = x3.dtype

    # Split the single Linear weight into x-part and context-part.
    w_x = weight[:dim_in, :]
    w_c = weight[dim_in:, :]

    # Lane-dense output: pad out_features to a multiple of 128 (sliced later).
    dim_out_p = _round_up(dim_out, 128)
    if dim_out_p != dim_out:
        pad = dim_out_p - dim_out
        w_x = jnp.pad(w_x, ((0, 0), (0, pad)))
        w_c = jnp.pad(w_c, ((0, 0), (0, pad)))
        bias = jnp.pad(bias, (0, pad))

    # Row tiling along the (flattened per-batch) sequence axis.
    tile_s = int(min(tile_s, _round_up(S, 8)))
    s_pad = _round_up(S, tile_s)
    if s_pad != S:
        x3 = jnp.pad(x3, ((0, 0), (0, s_pad - S), (0, 0)))

    ctx3 = context[:, None, :]                 # (B, 1, dim_ctx)
    bias2 = bias.reshape(1, dim_out_p)

    grid = (B, s_pad // tile_s)

    itemsize = jnp.dtype(out_dtype).itemsize
    cost = pl.CostEstimate(
        flops=2 * B * S * (dim_in + dim_ctx) * dim_out,
        transcendentals=0,
        bytes_accessed=(
            x3.size * x3.dtype.itemsize
            + ctx3.size * ctx3.dtype.itemsize
            + w_x.size * w_x.dtype.itemsize
            + w_c.size * w_c.dtype.itemsize
            + bias2.size * bias2.dtype.itemsize
            + B * s_pad * dim_out_p * itemsize
        ),
    )

    out = pl.pallas_call(
        concat_linear_kernel,
        out_shape=jax.ShapeDtypeStruct((B, s_pad, dim_out_p), out_dtype),
        grid=grid,
        in_specs=[
            # Per-batch context block; re-fetched only when the batch changes.
            pl.BlockSpec((None, 1, dim_ctx), lambda b, s: (b, 0, 0)),
            # Row tile of x.
            pl.BlockSpec((None, tile_s, dim_in), lambda b, s: (b, s, 0)),
            # Weights / bias: constant block index -> resident in VMEM.
            pl.BlockSpec((dim_in, dim_out_p), lambda b, s: (0, 0)),
            pl.BlockSpec((dim_ctx, dim_out_p), lambda b, s: (0, 0)),
            pl.BlockSpec((1, dim_out_p), lambda b, s: (0, 0)),
        ],
        out_specs=pl.BlockSpec((None, tile_s, dim_out_p), lambda b, s: (b, s, 0)),
        compiler_params=pltpu.CompilerParams(
            dimension_semantics=("parallel", "parallel"),
            vmem_limit_bytes=32 * 1024 * 1024,
        ),
        cost_estimate=cost,
    )(ctx3, x3, w_x, w_c, bias2)

    out = out[:, :S, :dim_out]
    if x_was_2d:
        out = out[:, 0, :]
    return out


def _reference(context, x, weight, bias):
    if x.ndim == 3:
        ctx = jnp.broadcast_to(
            context[:, None, :], (x.shape[0], x.shape[1], context.shape[-1])
        )
    else:
        ctx = context
    x_context = jnp.concatenate((x, ctx), axis=-1)
    return x_context @ weight + bias


if __name__ == "__main__":
    # Small shapes consistent with the module's forward.
    dim_in, dim_out, dim_c = 32, 32, 4
    B, S = 2, 8
    dim_ctx = 1 + dim_c

    key = jax.random.PRNGKey(0)
    k_ctx, k_x, k_w, k_b = jax.random.split(key, 4)

    # Linear parameters stored as (in_features, out_features).
    weight = jax.random.normal(k_w, (dim_in + dim_ctx, dim_out), jnp.float32) * 0.1
    bias = jax.random.normal(k_b, (dim_out,), jnp.float32) * 0.1

    context = jax.random.normal(k_ctx, (B, dim_ctx), jnp.float32)
    x = jax.random.normal(k_x, (B, S, dim_in), jnp.float32)  # 3-D case

    out = jax.block_until_ready(concat_linear(context, x, weight, bias, c=None))
    ref = _reference(context, x, weight, bias)
    assert out.shape == (B, S, dim_out)
    assert jnp.allclose(out, ref, rtol=1e-5, atol=1e-5), "3-D mismatch vs reference"

    # Also exercise the 2-D path (x.dim() == 2 in the PyTorch module).
    x2 = x[:, 0, :]
    out2 = jax.block_until_ready(concat_linear(context, x2, weight, bias, c=None))
    ref2 = _reference(context, x2, weight, bias)
    assert out2.shape == (B, dim_out)
    assert jnp.allclose(out2, ref2, rtol=1e-5, atol=1e-5), "2-D mismatch vs reference"

    print("KERNEL_OK")
</pallas_src>

<mosaic_0001>
module attributes {stable_mosaic.version = 11 : i64} {
  func.func @concat_linear_kernel(%arg0: i32, %arg1: i32, %arg2: memref<1x1x5xf32, #tpu.memory_space<vmem>>, %arg3: memref<1x8x32xf32, #tpu.memory_space<vmem>>, %arg4: memref<32x128xf32, #tpu.memory_space<vmem>>, %arg5: memref<5x128xf32, #tpu.memory_space<vmem>>, %arg6: memref<1x128xf32, #tpu.memory_space<vmem>>, %arg7: memref<1x8x128xf32, #tpu.memory_space<vmem>>) attributes {dimension_semantics = [#tpu.dimension_semantics<parallel>, #tpu.dimension_semantics<parallel>], iteration_bounds = array<i64: 2, 1>, scalar_prefetch = 0 : i64, scratch_operands = 0 : i64, tpu.core_type = #tpu.core_type<tc>, window_params = [{transform_indices = @transform_0, window_bounds = array<i64: 1, 1, 5>}, {transform_indices = @transform_1, window_bounds = array<i64: 1, 8, 32>}, {pipeline_mode = #tpu.pipeline_mode<synchronous>, transform_indices = @transform_2, window_bounds = array<i64: 32, 128>}, {pipeline_mode = #tpu.pipeline_mode<synchronous>, transform_indices = @transform_3, window_bounds = array<i64: 5, 128>}, {pipeline_mode = #tpu.pipeline_mode<synchronous>, transform_indices = @transform_4, window_bounds = array<i64: 1, 128>}, {transform_indices = @transform_5, window_bounds = array<i64: 1, 8, 128>}]} {
    %c0 = arith.constant 0 : index
    %c0_0 = arith.constant 0 : index
    %c0_1 = arith.constant 0 : index
    %0 = vector.load %arg2[%c0, %c0_0, %c0_1] : memref<1x1x5xf32, #tpu.memory_space<vmem>>, vector<1x1x5xf32>
    %1 = vector.shape_cast %0 : vector<1x1x5xf32> to vector<1x5xf32>
    %c0_2 = arith.constant 0 : index
    %c0_3 = arith.constant 0 : index
    %2 = vector.load %arg5[%c0_2, %c0_3] : memref<5x128xf32, #tpu.memory_space<vmem>>, vector<5x128xf32>
    %cst = arith.constant dense<0.000000e+00> : vector<1x128xf32>
    %3 = tpu.matmul %1, %2, %cst {dimension_numbers = #tpu.dot_dimension_numbers<[1], [0], [0], [1], [0, 0, 1, 1], [], []>} : vector<1x5xf32>, vector<5x128xf32>, vector<1x128xf32> -> vector<1x128xf32>
    %c0_4 = arith.constant 0 : index
    %c0_5 = arith.constant 0 : index
    %4 = vector.load %arg6[%c0_4, %c0_5] : memref<1x128xf32, #tpu.memory_space<vmem>>, vector<1x128xf32>
    %5 = arith.addf %3, %4 : vector<1x128xf32>
    %c0_6 = arith.constant 0 : index
    %c0_7 = arith.constant 0 : index
    %c0_8 = arith.constant 0 : index
    %6 = vector.load %arg3[%c0_6, %c0_7, %c0_8] : memref<1x8x32xf32, #tpu.memory_space<vmem>>, vector<1x8x32xf32>
    %7 = vector.shape_cast %6 : vector<1x8x32xf32> to vector<8x32xf32>
    %c0_9 = arith.constant 0 : index
    %c0_10 = arith.constant 0 : index
    %8 = vector.load %arg4[%c0_9, %c0_10] : memref<32x128xf32, #tpu.memory_space<vmem>>, vector<32x128xf32>
    %cst_11 = arith.constant dense<0.000000e+00> : vector<8x128xf32>
    %9 = tpu.matmul %7, %8, %cst_11 {dimension_numbers = #tpu.dot_dimension_numbers<[1], [0], [0], [1], [0, 0, 1, 1], [], []>} : vector<8x32xf32>, vector<32x128xf32>, vector<8x128xf32> -> vector<8x128xf32>
    %10 = vector.broadcast %5 : vector<1x128xf32> to vector<8x128xf32>
    %11 = arith.addf %9, %10 : vector<8x128xf32>
    %c0_12 = arith.constant 0 : index
    %c0_13 = arith.constant 0 : index
    %c0_14 = arith.constant 0 : index
    %12 = vector.load %arg7[%c0_12, %c0_13, %c0_14] : memref<1x8x128xf32, #tpu.memory_space<vmem>>, vector<1x8x128xf32>
    %13 = vector.shape_cast %12 : vector<1x8x128xf32> to vector<8x128xf32>
    %14 = vector.shape_cast %11 : vector<8x128xf32> to vector<1x8x128xf32>
    tpu.vector_store %arg7[%c0_12, %c0_13, %c0_14], %14 {strides = array<i32>} : memref<1x8x128xf32, #tpu.memory_space<vmem>>, vector<1x8x128xf32>,
    return
  }
  func.func @transform_0(%arg0: i32, %arg1: i32) -> (i32, i32, i32) {
    %c0_i32 = arith.constant 0 : i32
    %c0_i32_0 = arith.constant 0 : i32
    %c0_i32_1 = arith.constant 0 : i32
    return %arg0, %c0_i32, %c0_i32_0 : i32, i32, i32
  }
  func.func @transform_1(%arg0: i32, %arg1: i32) -> (i32, i32, i32) {
    %c0_i32 = arith.constant 0 : i32
    %c0_i32_0 = arith.constant 0 : i32
    return %arg0, %arg1, %c0_i32 : i32, i32, i32
  }
  func.func @transform_2(%arg0: i32, %arg1: i32) -> (i32, i32) {
    %c0_i32 = arith.constant 0 : i32
    %c0_i32_0 = arith.constant 0 : i32
    %c0_i32_1 = arith.constant 0 : i32
    return %c0_i32, %c0_i32_0 : i32, i32
  }
  func.func @transform_3(%arg0: i32, %arg1: i32) -> (i32, i32) {
    %c0_i32 = arith.constant 0 : i32
    %c0_i32_0 = arith.constant 0 : i32
    %c0_i32_1 = arith.constant 0 : i32
    return %c0_i32, %c0_i32_0 : i32, i32
  }
  func.func @transform_4(%arg0: i32, %arg1: i32) -> (i32, i32) {
    %c0_i32 = arith.constant 0 : i32
    %c0_i32_0 = arith.constant 0 : i32
    %c0_i32_1 = arith.constant 0 : i32
    return %c0_i32, %c0_i32_0 : i32, i32
  }
  func.func @transform_5(%arg0: i32, %arg1: i32) -> (i32, i32, i32) {
    %c0_i32 = arith.constant 0 : i32
    %c0_i32_0 = arith.constant 0 : i32
    return %arg0, %arg1, %c0_i32 : i32, i32, i32
  }
}

</mosaic_0001>

<bundles_post_ra>
// kernel: tpu_custom_call.1
= control target key start
LH: loop header
LB: loop body
LE: loop exit
PB: predicated region body
PF: predicated region fallthrough
CT: control target
= control target key end

     0   :  { %s1199_s0 = inlined_call_operand.hbm [shape: f32[2,1,5], index: 0, kind: input, shape index: {}]   ;;  %s1200_s1 = inlined_call_operand.hbm [shape: f32[2,8,32], index: 1, kind: input, shape index: {}]   ;;  %s1201_s2 = inlined_call_operand.hbm [shape: f32[32,128], index: 2, kind: input, shape index: {}]   ;;  %s1202_s3 = inlined_call_operand.vmem [shape: f32[5,128], index: 3, kind: input, shape index: {}]   ;;  %s1203_s4 = inlined_call_operand.vmem [shape: f32[1,128], index: 4, kind: input, shape index: {}]   ;;  %s1204_s5 = inlined_call_operand.hbm [shape: f32[2,8,128], index: 5, kind: output, shape index: {}]  }
   0x1   :  { %1210 = sst [smem:[#allocation14_spill]] %s1199_s0 }
   0x2   :  { %1211 = sst [smem:[#allocation15_spill]] %s1201_s2 }
   0x3   :  { %10 = vsyncpa [#allocation3], 0 }
   0x4   :  { %12 = vsyncpa [#allocation3 + $0x1], 0 }
   0x5   :  { %13 = vsyncpa [#allocation6], 0 }
   0x6   :  { %15 = vsyncpa [#allocation6 + $0x1], 0 }
   0x7   :  { %16 = vsyncpa [#allocation4], 0 }
   0x8   :  { %18 = vsyncpa [#allocation4 + $0x1], 0  ;;  %s944_s18 = smov 0   ;;  %s946_s19 = smov 0  }
   0x9   :  { %s948_s20 = smov 0   ;;  %s950_s21 = smov 0  }
   0xa   :  { %s952_s22 = smov 0   ;;  %s954_s23 = smov 0  }
   0xb LB: > { %s975_s24 = sadd.s32 4294967295, %s903_s23   ;;  %s595_s25 = sadd.s32 4294967294, %s903_s23   ;;  %s903_s23 = sphi %s954_s23, %s24_s23   ;;  %s899_s22 = sphi %s952_s22, %s1235_s22   ;;  %s895_s21 = sphi %s950_s21, %s1234_s21   ;;  %s891_s20 = sphi %s948_s20, %s1233_s20   ;;  %s887_s19 = sphi %s946_s19, %s1232_s19   ;;  %s883_s18 = sphi %s944_s18, %s1231_s18  }
   0xc   : > { %p56_p0 = scmp.ne.s32.totalorder %s887_s19, %s883_s18  ;;  %p1205_p1 = scmp.eq.s32.totalorder %s975_s24, 0 }
   0xd   : > { %p179_p3 = scmp.eq.s32.totalorder %s595_s25, 1  ;;  %p596_p5 = scmp.ge.s32.totalorder %s903_s23, 1 }
   0xe   : > { %p984_p4 = por %p1205_p1, %p56_p0  ;;  %p186_p7 = scmp.lt.s32.totalorder %s903_s23, 3 }
   0xf   : > { %p989_p6 = por %p179_p3, %p56_p0  ;;  %s905_s29 = smov [#allocation7]  }
  0x10   : > { %s1212_s26 = scalar_select %p984_p4, 1, 0 }
  0x11   : > { %s1213_s27 = scalar_select %p989_p6, 1, 0 }
  0x12   : > { %p994_p8 = pnand %p596_p5, %p186_p7  ;;  %s198_s30 = sshll.u32 %s905_s29, 4  ;;  %s199_s30 = int_to_ptr.vmem [resolvable:$true] %s198_s30 }
  0x13   : > { %s36_s7 = sadd.s32 1, %s899_s22  ;;  %s1216_s2 = sld [smem:[#allocation15_spill]] }
  0x14   : > { %s1214_s28 = scalar_select %p994_p8, 1, 0 }
  0x15   : > { %p652_p9 = pneg %p994_p8 }
  0x17   : > { %p1003_p11 = pnand %p652_p9, %p1205_p1 }
  0x19   : > { %s725_s10 = scalar_lea.hbm %s1216_s2, 512  ;;  %p727_p13 = pneg %p1003_p11 }
  0x1a   : > { %p726_p12 = scmp.ne.s32.totalorder %s1216_s2, %s725_s10  ;;  %p732_p5 = scmp.lt.u32.totalorder %s725_s10, %s1216_s2 }
  0x1c   : > { %p728_p0 = pnand %p727_p13, %p726_p12 }
  0x1e   : > { %p729_p3 = pneg %p728_p0 }
  0x20   : > { %p734_p7 = pnand %p732_p5, %p729_p3 }
  0x22   : > { %737 = shalt.err (!%p734_p7)
}
  0x23   : > { %s738_s15 = scalar_lea.vmem %s199_s30, 512  ;;  %p746_p2 = scmp.lt.s32.totalorder %s199_s30, %s199_s30 }
  0x24   : > { %p739_p9 = scmp.ne.s32.totalorder %s199_s30, %s738_s15  ;;  %p747_p6 = scmp.lt.s32.totalorder %s738_s15, %s738_s15 }
  0x26   : > { %p741_p10 = pnand %p739_p9, %p727_p13  ;;  %p748_p4 = por %p747_p6, %p746_p2 }
  0x28   : > { %p742_p1 = pneg %p741_p10 }
  0x2a   : > { %p749_p8 = pnand %p748_p4, %p742_p1 }
  0x2c   : > { %752 = shalt.err (!%p749_p8)
}
  0x2d   : > { %s906_s16 = smov 128   ;;  %s907_s17 = smov 8  }
  0x2e   : > { %655 = dma.hbm_to_vmem [thread:$0]  (!%p1003_p11), %s1216_s2, 512, %s199_s30, [#allocation6], %s906_s16, %s906_s16, %s907_s17  }
  0x2f   : > { %p38_p1 = scmp.ge.s32.totalorder %s36_s7, 2  ;;  %s43_s8 = sadd.s32 1, %s891_s20 }
  0x30   : > { %p50_p2 = scmp.ne.s32.totalorder %s891_s20, %s887_s19  ;;  %p51_p4 = scmp.eq.s32.totalorder %s903_s23, 0 }
  0x31   : > { %s1237_s7 = smov (%p38_p1, %s36_s7), 0  ;;  %p1218_p8 = scmp.eq.s32.totalorder %s975_s24, 1 }
  0x32   : > { %1217 = sst [smem:[#allocation13_spill]] %s1237_s7  ;;  %p52_p6 = por %p51_p4, %p50_p2 }
  0x33   : > { %p1032_p10 = por %p1218_p8, %p50_p2  ;;  %s40_s10 = ssub.s32 %s899_s22, %s1237_s7 }
  0x34   : > { %p668_p12 = scmp.lt.s32.totalorder %s903_s23, 2  ;;  %p41_p13 = scmp.eq.s32.totalorder %s40_s10, 0 }
  0x35   : > { %s1219_s9 = scalar_select %p1032_p10, 1, 0 }
  0x36   : > { %s1040_s6 = sand.u32 1, %s891_s20   ;;  %s599_s11 = sshll.u32 %s899_s22, 4 }
  0x37   : > { %s1043_s30 = scalar_select %p41_p13, %s891_s20, %s43_s8  }
  0x38   : > { %s221_s12 = scalar_lea.vmem [#allocation2], %s1040_s6  ;;  %s1220_s0 = sld [smem:[#allocation14_spill]] }
  0x39   : > { %s228_s13 = sshll.u32 %s221_s12, 4  ;;  %p1054_p11 = pnand %p668_p12, %p52_p6  ;;  %s1052_s13 = int_to_ptr.vmem [resolvable:$true] %s228_s13 }
  0x3a   : > { %s600_s29 = sshll.u32 %s1040_s6, 3  ;;  %s219_s8 = scalar_lea.sflag [#allocation3], %s1040_s6 }
  0x3b   : > { %p755_p3 = pneg %p1054_p11 }
  0x3e   : > { %s1050_s16 = scalar_lea.hbm %s1220_s0, %s599_s11  ;;  %s758_s14 = scalar_lea.hbm %s1220_s0, 32 }
  0x3f   : > { %s753_s10 = scalar_lea.hbm %s1050_s16, 16  ;;  %p759_p9 = scmp.lt.u32.totalorder %s1050_s16, %s1220_s0 }
  0x40   : > { %p754_p0 = scmp.ne.s32.totalorder %s1050_s16, %s753_s10  ;;  %p760_p1 = scmp.lt.u32.totalorder %s758_s14, %s753_s10 }
  0x41   : > { %p762_p4 = scmp.lt.u32.totalorder %s753_s10, %s1050_s16 }
  0x42   : > { %p756_p5 = pnand %p755_p3, %p754_p0  ;;  %p761_p2 = por %p760_p1, %p759_p9 }
  0x44   : > { %p757_p7 = pneg %p756_p5  ;;  %p763_p6 = por %p762_p4, %p761_p2 }
  0x46   : > { %p764_p8 = pnand %p763_p6, %p757_p7 }
  0x48   : > { %767 = shalt.err (!%p764_p8)
}
  0x49   : > { %s768_s25 = scalar_lea.vmem %s1052_s13, 16  ;;  %s908_s11 = smov [#allocation2]  }
  0x4a   : > { %p769_p12 = scmp.ne.s32.totalorder %s1052_s13, %s768_s25  ;;  %s773_s12 = sshll.u32 %s908_s11, 4  ;;  %s774_s12 = int_to_ptr.vmem [resolvable:$false] %s773_s12 }
  0x4b   : > { %s775_s2 = scalar_lea.vmem %s774_s12, 32  ;;  %p776_p5 = scmp.lt.s32.totalorder %s1052_s13, %s774_s12 }
  0x4c   : > { %p771_p13 = pnand %p769_p12, %p755_p3  ;;  %p777_p9 = scmp.lt.s32.totalorder %s775_s2, %s768_s25 }
  0x4e   : > { %p772_p0 = pneg %p771_p13  ;;  %p778_p1 = por %p777_p9, %p776_p5 }
  0x50   : > { %p779_p2 = pnand %p778_p1, %p772_p0 }
  0x52   : > { %782 = shalt.err (!%p779_p2)
}
  0x53   : > { %659 = dma.hbm_to_vmem [thread:$0]  (!%p1054_p11), %s1050_s16, 16, %s1052_s13, %s219_s8  }
  0x54   : > { %s601_s10 = sshll.u32 %s899_s22, 7  ;;  %s239_s14 = scalar_lea.vmem [#allocation5], %s600_s29 }
  0x55   : > { %s247_s15 = sshll.u32 %s239_s14, 4  ;;  %s1092_s25 = scalar_lea.hbm %s1200_s1, %s601_s10  ;;  %s248_s15 = int_to_ptr.vmem [resolvable:$true] %s247_s15 }
  0x56   : > { %s1222_s12 = sand.u32 1, %s903_s23   ;;  %s783_s7 = scalar_lea.hbm %s1092_s25, 128 }
  0x57   : > { %s236_s2 = scalar_lea.sflag [#allocation6], %s1222_s12  ;;  %p784_p7 = scmp.ne.s32.totalorder %s1092_s25, %s783_s7 }
  0x58   : > { %s788_s16 = scalar_lea.hbm %s1200_s1, 256  ;;  %p789_p8 = scmp.lt.u32.totalorder %s1092_s25, %s1200_s1 }
  0x59   : > { %p786_p4 = pnand %p784_p7, %p755_p3  ;;  %p790_p12 = scmp.lt.u32.totalorder %s788_s16, %s783_s7 }
  0x5a   : > { %p792_p0 = scmp.lt.u32.totalorder %s783_s7, %s1092_s25 }
  0x5b   : > { %p787_p6 = pneg %p786_p4  ;;  %p791_p13 = por %p790_p12, %p789_p8 }
  0x5d   : > { %p793_p5 = por %p792_p0, %p791_p13 }
  0x5f   : > { %p794_p9 = pnand %p793_p5, %p787_p6 }
  0x61   : > { %797 = shalt.err (!%p794_p9)
}
  0x62   : > { %s798_s8 = scalar_lea.vmem %s248_s15, 128  ;;  %s909_s10 = smov [#allocation5]  }
  0x63   : > { %p799_p1 = scmp.ne.s32.totalorder %s248_s15, %s798_s8  ;;  %s803_s14 = sshll.u32 %s909_s10, 4  ;;  %s804_s14 = int_to_ptr.vmem [resolvable:$false] %s803_s14 }
  0x64   : > { %s805_s11 = scalar_lea.vmem %s804_s14, 256  ;;  %p806_p4 = scmp.lt.s32.totalorder %s248_s15, %s804_s14 }
  0x65   : > { %p801_p2 = pnand %p799_p1, %p755_p3  ;;  %p807_p10 = scmp.lt.s32.totalorder %s805_s11, %s798_s8 }
  0x67   : > { %p802_p7 = pneg %p801_p2  ;;  %p808_p8 = por %p807_p10, %p806_p4 }
  0x69   : > { %p809_p12 = pnand %p808_p8, %p802_p7 }
  0x6b   : > { %812 = shalt.err (!%p809_p12)
}
  0x6c   : > { %662 = dma.hbm_to_vmem [thread:$0]  (!%p1054_p11), %s1092_s25, 128, %s248_s15, %s236_s2  }
  0x6d   : > { %p1223_p6 = scmp.ne.s32.totalorder %s1214_s28, 0 }
  0x6e   : > { %s1118_s7 = sand.u32 (!%p1223_p6), 1, %s887_s19   ;;  %p1224_p3 = scmp.ne.s32.totalorder (!%p1223_p6), %s1212_s26, 0 }
  0x6f   : > { %256 = sbr.rel (%p1223_p6) target bundleno = 363 (0x16b), region = 40  ;;  %s259_s12 = scalar_lea.sflag (!%p1223_p6), [#allocation3], %s1118_s7 }
  0x70   : > { %s261_s6 = scalar_lea.vmem (!%p1223_p6), [#allocation2], %s1118_s7 }
  0x76   : > { %866 = dma.done.wait (%p1224_p3), %s259_s12, 16  }
  0x77   : > { %868 = vsyncadd (%p1224_p3), %s259_s12, 4294967280  ;;  %s266_s17 = sand.u32 1, %s975_s24   ;;  %s603_s28 = sshll.u32 %s1118_s7, 3 }
  0x78   : > { %s267_s15 = scalar_lea.sflag [#allocation6], %s266_s17  ;;  %s270_s25 = scalar_lea.vmem [#allocation5], %s603_s28 }
  0x79   : > { %870 = dma.done.wait (%p1224_p3), %s267_s15, 128  }
  0x7a   : > { %872 = vsyncadd (%p1224_p3), %s267_s15, 4294967168  ;;  %p1225_p10 = scmp.eq.s32.totalorder %s975_s24, 0 }
  0x7c   : > { %874 = dma.done.wait (%p1225_p10), [#allocation6], 512   ;;  %p1226_p11 = pmov %p1225_p10 }
  0x7d   : > { %v910_v0 = vmov 0.0|0.0   ;;  %v911_v1 = vmov 0.0   ;;  %vm912_vm0 = vmmov 0   ;;  %vm312_vm1 = vcmask 1044480   ;;  %v387_v2 = vld [vmem:[#allocation7] sm:$0xff]  ;;  %v388_v3 = vld [vmem:[#allocation7 + $0x8] sm:$0xff] }
  0x7e   : > { %876 = vsyncadd (%p1226_p11), [#allocation6], 4294966784  ;;  %636 = vmatprep.subr.bf16.mxu1 %v910_v0  ;;  %620 = vmatprep.subr.mxu0 %v911_v1  ;;  %vm308_vm2 = vcmask 39936   ;;  %v306_v4 = vld [vmem:[%s1202_s3] sm:$0x1f]  ;;  %v637_v5 = vpack.c.bf16 %v388_v3, %v387_v2  ;;  %v389_v7 = vld [vmem:[#allocation7 + $0x10] sm:$0xff]  ;;  %v391_v11 = vlaneseq }
  0x7f   : > { %622 = vmatprep.mubr.msk.f32.mxu0 %vm912_vm0, %v911_v1  ;;  %633 = vmatprep.mubr.msk.f32.mxu1 %vm912_vm0, %v911_v1  ;;  %v305_v6 = vld [vmem:[%s261_s6] sm:$0x1]  ;;  %v390_v8 = vld [vmem:[#allocation7 + $0x18] sm:$0xff]  ;;  %vm395_vm3 = vcmask 261120   ;;  %s610_s16 = sshll.u32 %s895_s21, 7  ;;  %s304_s0 = scalar_lea.vmem [#allocation8], %s603_s28 }
  0x80   : > { %621 = vmatpush3.msk.msra.mxu0 %vm312_vm1, %v306_v4  ;;  %638 = vmatpush3.bf16.msra.mxu1 %v637_v5  ;;  %v640_v9 = vpack.c.bf16 %v390_v8, %v389_v7  ;;  %v386_v10 = vld [vmem:[%s270_s25] sm:$0xff]  ;;  %v392_v12 = vshrl.u32 %v391_v11, 7  ;;  %v307_v13 = vld [vmem:[%s1203_s4] sm:$0x1]  ;;  %s485_s29 = sshll.u32 %s304_s0, 4  ;;  %s1150_s14 = scalar_lea.hbm %s1204_s5, %s610_s16  ;;  %s1152_s29 = int_to_ptr.vmem [resolvable:$true] %s485_s29 }
  0x81   : > { %623 = vmatmul.mubr.msk.f32.vlgmr.msra.gmra.mrb[0].mxu0 %vm308_vm2, %v305_v6  ;;  %639 = vmatprep.subr.bf16.mxu1 %v910_v0  ;;  %s471_s11 = scalar_lea.sflag [#allocation4], %s1118_s7  ;;  %s813_s12 = scalar_lea.vmem %s1152_s29, 128 }
  0x82   : > { %v393_v17 = vsub.s32 0, %v392_v12  ;;  %p814_p13 = scmp.ne.s32.totalorder %s1152_s29, %s813_s12  ;;  %p1227_p0 = scmp.ne.s32.totalorder %s1219_s9, 0 }
  0x83   : > { %s913_s21 = smov [#allocation8]  }
  0x84   : > { %641 = vmatpush3.bf16.msra.mxu1 %v640_v9  ;;  %p815_p5 = pnand %p814_p13, %p1227_p0  ;;  %s817_s6 = sshll.u32 %s913_s21, 4  ;;  %s818_s6 = int_to_ptr.vmem [resolvable:$false] %s817_s6 }
  0x85   : > { %s819_s17 = scalar_lea.vmem %s818_s6, 256  ;;  %p820_p1 = scmp.lt.s32.totalorder %s1152_s29, %s818_s6 }
  0x86   : > { %p816_p9 = pneg %p815_p5  ;;  %p821_p2 = scmp.lt.s32.totalorder %s819_s17, %s813_s12 }
  0x87   : > { %634 = vmatmul.mubr.msk.f32.vlgmr.msra.gmra.mrb[0].mxu1 %vm395_vm3, %v386_v10 }
  0x88   : > { %p822_p7 = por %p821_p2, %p820_p1 }
  0x8a   : > { %p823_p4 = pnand %p822_p7, %p816_p9 }
 0x154   : > { %v382_v14 = vpop.f32.mrb[0].mxu0 }
 0x155   : > { %v383_v15 = vadd.f32 %v382_v14, %v307_v13  ;;  %v624_v16 = vpop.f32.mrb[1].mxu0 }
 0x157   : > { %v394_v18 = vrot.slane %v383_v15, %v393_v17 }
 0x15a   : > { %v465_v19 = vpop.f32.mrb[0].mxu1 }
 0x15b   : > { %v466_v20 = vadd.f32 %v465_v19, %v394_v18  ;;  %v635_v21 = vpop.f32.mrb[1].mxu1 }
 0x15d   : > { %469 = vst [vmem:[%s304_s0] sm:$0xff] %v466_v20 }
 0x15e   : > { %826 = shalt.err (!%p823_p4)
}
 0x15f   : > { %s827_s7 = scalar_lea.hbm %s1150_s14, 128  ;;  %s831_s25 = scalar_lea.hbm %s1204_s5, 256 }
 0x160   : > { %p828_p8 = scmp.ne.s32.totalorder %s1150_s14, %s827_s7  ;;  %p832_p3 = scmp.lt.u32.totalorder %s1150_s14, %s1204_s5 }
 0x161   : > { %p833_p10 = scmp.lt.u32.totalorder %s831_s25, %s827_s7  ;;  %p835_p13 = scmp.lt.u32.totalorder %s827_s7, %s1150_s14 }
 0x162   : > { %p829_p12 = pnand %p828_p8, %p1227_p0 }
 0x163   : > { %p834_p11 = por %p833_p10, %p832_p3 }
 0x164   : > { %p830_p6 = pneg %p829_p12 }
 0x165   : > { %p836_p5 = por %p835_p13, %p834_p11 }
 0x167   : > { %p837_p9 = pnand %p836_p5, %p830_p6 }
 0x169   : > { %840 = shalt.err (!%p837_p9)
}
 0x16a   : > { %650 = dma.vmem_to_hbm [thread:$0]  (%p1227_p0), %s1152_s29, 128, %s1150_s14, %s471_s11  }
 0x16b PF: > { %s497_s24 = sand.u32 1, %s883_s18   ;;  %p1228_p1 = scmp.ne.s32.totalorder %s1213_s27, 0 }
 0x16c   : > { %p1229_p2 = scmp.ge.s32.totalorder %s903_s23, 2  ;;  %s498_s13 = scalar_lea.sflag [#allocation4], %s497_s24 }
 0x16e   : > { %p664_p7 = pnand %p1229_p2, %p1228_p1 }
 0x170   : > { %878 = dma.done.wait (!%p664_p7), %s498_s13, 128  }
 0x171   : > { %880 = vsyncadd (!%p664_p7), %s498_s13, 4294967168  ;;  %s24_s23 = sadd.s32 1, %s903_s23   ;;  %s1230_s9 = sld [smem:[#allocation13_spill]] }
 0x172   : > { %p21_p4 = scmp.ge.s32.totalorder %s24_s23, 4   ;;  %s1231_s18 = smov %s887_s19 }
 0x173   : > { %s1232_s19 = smov %s891_s20  ;;  %s1233_s20 = smov %s1043_s30 }
 0x174   : > { %s1234_s21 = smov %s899_s22  ;;  %23 = sbr.rel (!%p21_p4) target bundleno = 11 (0xb), region = 102 }
 0x177   : > { %s1235_s22 = smov %s1230_s9 }
 0x17b   :  { %503 = vsyncpa [#allocation3], 1 }
 0x17c   :  { %505 = vsyncpa [#allocation3 + $0x1], 1 }
 0x17d   :  { %506 = vsyncpa [#allocation6], 1 }
 0x17e   :  { %508 = vsyncpa [#allocation6 + $0x1], 1 }
 0x17f   :  { %509 = vsyncpa [#allocation4], 1 }
 0x180   :  { %511 = vsyncpa [#allocation4 + $0x1], 1 }

</bundles_post_ra>
